<compile_context>
chip_gen: v7x
topology: tpu7x:2x2x1
jax: 0.10.0
libtpu: 0.0.40
codegen_flags: <defaults>
</compile_context>

<pallas_src>
import functools

import jax
import jax.numpy as jnp
from jax.experimental import pallas as pl
from jax.experimental.pallas import tpu as pltpu

_LANE = 128


def _round_up(n, m):
    return ((n + m - 1) // m) * m


def mlp_kernel(x_ref, w1_ref, b1_ref, w2_ref, b2_ref, w3_ref, b3_ref,
               w4_ref, b4_ref, o_ref, *, compute_dtype):
    # Layer 1: Linear + ReLU  (bf16 matmul, f32 accumulate / bias / ReLU)
    h = jnp.dot(x_ref[...], w1_ref[...], preferred_element_type=jnp.float32)
    h = jnp.maximum(h + b1_ref[...], 0.0)
    # Layer 2: Linear + ReLU
    h = jnp.dot(h.astype(compute_dtype), w2_ref[...],
                preferred_element_type=jnp.float32)
    h = jnp.maximum(h + b2_ref[...], 0.0)
    # Layer 3: Linear + ReLU
    h = jnp.dot(h.astype(compute_dtype), w3_ref[...],
                preferred_element_type=jnp.float32)
    h = jnp.maximum(h + b3_ref[...], 0.0)
    # Classifier: Linear (no activation)
    out = jnp.dot(h.astype(compute_dtype), w4_ref[...],
                  preferred_element_type=jnp.float32)
    o_ref[...] = (out + b4_ref[...]).astype(o_ref.dtype)


def _four_layer_mlp_impl(x, params, *, block_m, compute_dtype):
    """x: [B, C, H, W] float32.  params: dict of transposed weights/biases."""
    B = x.shape[0]
    x2d = x.reshape(B, -1).astype(jnp.float32)   # torch.flatten(x, 1)
    d_in = x2d.shape[1]

    w = [params["w1"], params["w2"], params["w3"], params["w4"]]
    b = [params["b1"], params["b2"], params["b3"], params["b4"]]
    dims_in = [wi.shape[0] for wi in w]
    dims_out = [wi.shape[1] for wi in w]
    num_classes = dims_out[-1]
    assert dims_in[0] == d_in, (dims_in[0], d_in)

    # ---- zero-pad every feature dim to a multiple of 128 (lane-dense) -----
    pad_in = [_round_up(d, _LANE) for d in dims_in]
    pad_out = [_round_up(d, _LANE) for d in dims_out]
    wp, bp = [], []
    for wi, bi, pi, po in zip(w, b, pad_in, pad_out):
        wi = jnp.pad(wi, ((0, pi - wi.shape[0]), (0, po - wi.shape[1])))
        bi = jnp.pad(bi.reshape(1, -1), ((0, 0), (0, po - bi.shape[-1])))
        wp.append(wi.astype(compute_dtype))      # bf16 weights
        bp.append(bi.astype(jnp.float32))        # f32 biases
    d_in_p, nc_p = pad_in[0], pad_out[-1]

    # ---- batch tiling ------------------------------------------------------
    sub = 16 if compute_dtype == jnp.bfloat16 else 8   # sublane packing
    if block_m is None:
        block_m = max(sub, min(256, _round_up(B, sub)))
    B_p = _round_up(B, block_m)
    x2d = jnp.pad(x2d, ((0, B_p - B), (0, d_in_p - d_in))).astype(compute_dtype)
    grid = (pl.cdiv(B_p, block_m),)

    # x / out move per grid step; weights & biases stay VMEM-resident.
    resident = lambda shape: pl.BlockSpec(shape, lambda i: (0, 0))
    in_specs = [pl.BlockSpec((block_m, d_in_p), lambda i: (i, 0))]
    for wi, bi in zip(wp, bp):
        in_specs.append(resident(wi.shape))
        in_specs.append(resident(bi.shape))
    out_spec = pl.BlockSpec((block_m, nc_p), lambda i: (i, 0))

    # ---- right-size the VMEM request from the actual footprint ------------
    itemsize = jnp.dtype(compute_dtype).itemsize
    wbytes = sum(int(t.size) * t.dtype.itemsize for t in wp)   # single-buffered
    bbytes = sum(int(t.size) * t.dtype.itemsize for t in bp)
    io_bytes = 2 * (block_m * d_in_p * itemsize + block_m * nc_p * 4)  # dbl-buf
    act_bytes = block_m * max(pad_in + pad_out) * 4 * 3        # f32 temporaries
    vmem_limit = int(min(64 << 20,
                         max(8 << 20,
                             wbytes + bbytes + io_bytes + act_bytes)))

    out = pl.pallas_call(
        functools.partial(mlp_kernel, compute_dtype=compute_dtype),
        out_shape=jax.ShapeDtypeStruct((B_p, nc_p), jnp.float32),
        grid=grid,
        in_specs=in_specs,
        out_specs=out_spec,
        compiler_params=pltpu.CompilerParams(
            dimension_semantics=("parallel",),   # v7x: shard batch over 2 TCs
            vmem_limit_bytes=vmem_limit,
        ),
    )(x2d, wp[0], bp[0], wp[1], bp[1], wp[2], bp[2], wp[3], bp[3])

    return out[:B, :num_classes]
    # TODO(synk): for repeated tiny-batch serving, keep weights VMEM-resident
    # across calls (cross-pallas_call prefetch) instead of re-DMAing each call.


@functools.partial(jax.jit, static_argnames=("block_m", "compute_dtype"))
def four_layer_mlp(x, params, *, block_m=None, compute_dtype=jnp.bfloat16):
    return _four_layer_mlp_impl(x, params, block_m=block_m,
                                compute_dtype=compute_dtype)


def init_params(key, d_in, d_1, d_2, d_3, num_classes):
    """Deterministic init mimicking nn.Linear's U(-1/sqrt(fan_in), 1/sqrt(fan_in)).
    Weights are stored already transposed: [fan_in, fan_out]."""
    dims = [(d_in, d_1), (d_1, d_2), (d_2, d_3), (d_3, num_classes)]
    params = {}
    for i, (fan_in, fan_out) in enumerate(dims, start=1):
        key, kw, kb = jax.random.split(key, 3)
        bound = 1.0 / jnp.sqrt(float(fan_in))
        params[f"w{i}"] = jax.random.uniform(
            kw, (fan_in, fan_out), jnp.float32, -bound, bound)
        params[f"b{i}"] = jax.random.uniform(
            kb, (1, fan_out), jnp.float32, -bound, bound)
    return params


def reference_forward_f32(x, params):
    """Pure-f32 forward, numerically identical to the PyTorch module."""
    B = x.shape[0]
    h = x.reshape(B, -1)
    h = jnp.maximum(h @ params["w1"] + params["b1"], 0.0)
    h = jnp.maximum(h @ params["w2"] + params["b2"], 0.0)
    h = jnp.maximum(h @ params["w3"] + params["b3"], 0.0)
    return h @ params["w4"] + params["b4"]


def reference_forward_bf16(x, params):
    """Same bf16-weights / f32-accumulate recipe the kernel uses."""
    B = x.shape[0]
    h = x.reshape(B, -1).astype(jnp.bfloat16)
    for i in (1, 2, 3):
        h = jnp.dot(h, params[f"w{i}"].astype(jnp.bfloat16),
                    preferred_element_type=jnp.float32)
        h = jnp.maximum(h + params[f"b{i}"], 0.0).astype(jnp.bfloat16)
    out = jnp.dot(h, params["w4"].astype(jnp.bfloat16),
                  preferred_element_type=jnp.float32)
    return out + params["b4"]


if __name__ == "__main__":
    # Small shapes: x is [B=2, C=4, H=16, W=16] -> d_in = 1024
    B, C, H, W = 2, 4, 16, 16
    d_in = C * H * W
    d_1, d_2, d_3, num_classes = 256, 128, 64, 10

    key = jax.random.PRNGKey(0)
    key, kx = jax.random.split(key)
    x = jax.random.normal(kx, (B, C, H, W), jnp.float32)
    params = init_params(key, d_in, d_1, d_2, d_3, num_classes)

    out = jax.block_until_ready(four_layer_mlp(x, params))
    assert out.shape == (B, num_classes)

    # Tight check against a reference with the kernel's exact numerics
    # (bf16 weights/activations, f32 accumulation).
    ref_q = reference_forward_bf16(x, params)
    assert jnp.allclose(out, ref_q, atol=1e-3, rtol=1e-2), "mismatch vs bf16 reference"

    # Loose check against the pure-f32 PyTorch-equivalent forward.
    ref_f32 = reference_forward_f32(x, params)
    assert jnp.allclose(out, ref_f32, atol=5e-2, rtol=5e-2), "drifted vs f32 reference"

    print("KERNEL_OK")
</pallas_src>

<mosaic_0001>
module attributes {stable_mosaic.version = 11 : i64} {
  func.func @mlp_kernel(%arg0: i32, %arg1: memref<16x1024xbf16, #tpu.memory_space<vmem>>, %arg2: memref<1024x256xbf16, #tpu.memory_space<vmem>>, %arg3: memref<1x256xf32, #tpu.memory_space<vmem>>, %arg4: memref<256x128xbf16, #tpu.memory_space<vmem>>, %arg5: memref<1x128xf32, #tpu.memory_space<vmem>>, %arg6: memref<128x128xbf16, #tpu.memory_space<vmem>>, %arg7: memref<1x128xf32, #tpu.memory_space<vmem>>, %arg8: memref<128x128xbf16, #tpu.memory_space<vmem>>, %arg9: memref<1x128xf32, #tpu.memory_space<vmem>>, %arg10: memref<16x128xf32, #tpu.memory_space<vmem>>) attributes {dimension_semantics = [#tpu.dimension_semantics<parallel>], iteration_bounds = array<i64: 1>, scalar_prefetch = 0 : i64, scratch_operands = 0 : i64, tpu.core_type = #tpu.core_type<tc>, window_params = [{transform_indices = @transform_0, window_bounds = array<i64: 16, 1024>}, {pipeline_mode = #tpu.pipeline_mode<synchronous>, transform_indices = @transform_1, window_bounds = array<i64: 1024, 256>}, {pipeline_mode = #tpu.pipeline_mode<synchronous>, transform_indices = @transform_2, window_bounds = array<i64: 1, 256>}, {pipeline_mode = #tpu.pipeline_mode<synchronous>, transform_indices = @transform_3, window_bounds = array<i64: 256, 128>}, {pipeline_mode = #tpu.pipeline_mode<synchronous>, transform_indices = @transform_4, window_bounds = array<i64: 1, 128>}, {pipeline_mode = #tpu.pipeline_mode<synchronous>, transform_indices = @transform_5, window_bounds = array<i64: 128, 128>}, {pipeline_mode = #tpu.pipeline_mode<synchronous>, transform_indices = @transform_6, window_bounds = array<i64: 1, 128>}, {pipeline_mode = #tpu.pipeline_mode<synchronous>, transform_indices = @transform_7, window_bounds = array<i64: 128, 128>}, {pipeline_mode = #tpu.pipeline_mode<synchronous>, transform_indices = @transform_8, window_bounds = array<i64: 1, 128>}, {transform_indices = @transform_9, window_bounds = array<i64: 16, 128>}]} {
    %c0 = arith.constant 0 : index
    %c0_0 = arith.constant 0 : index
    %0 = vector.load %arg1[%c0, %c0_0] : memref<16x1024xbf16, #tpu.memory_space<vmem>>, vector<16x1024xbf16>
    %c0_1 = arith.constant 0 : index
    %c0_2 = arith.constant 0 : index
    %1 = vector.load %arg2[%c0_1, %c0_2] : memref<1024x256xbf16, #tpu.memory_space<vmem>>, vector<1024x256xbf16>
    %cst = arith.constant dense<0.000000e+00> : vector<16x256xf32>
    %2 = tpu.matmul %0, %1, %cst {dimension_numbers = #tpu.dot_dimension_numbers<[1], [0], [0], [1], [0, 0, 1, 1], [], []>} : vector<16x1024xbf16>, vector<1024x256xbf16>, vector<16x256xf32> -> vector<16x256xf32>
    %c0_3 = arith.constant 0 : index
    %c0_4 = arith.constant 0 : index
    %3 = vector.load %arg3[%c0_3, %c0_4] : memref<1x256xf32, #tpu.memory_space<vmem>>, vector<1x256xf32>
    %4 = vector.broadcast %3 : vector<1x256xf32> to vector<16x256xf32>
    %5 = arith.addf %2, %4 : vector<16x256xf32>
    %cst_5 = arith.constant 0.000000e+00 : f32
    %6 = vector.broadcast %cst_5 : f32 to vector<16x256xf32>
    %7 = arith.maximumf %5, %6 : vector<16x256xf32>
    %8 = arith.truncf %7 : vector<16x256xf32> to vector<16x256xbf16>
    %c0_6 = arith.constant 0 : index
    %c0_7 = arith.constant 0 : index
    %9 = vector.load %arg4[%c0_6, %c0_7] : memref<256x128xbf16, #tpu.memory_space<vmem>>, vector<256x128xbf16>
    %cst_8 = arith.constant dense<0.000000e+00> : vector<16x128xf32>
    %10 = tpu.matmul %8, %9, %cst_8 {dimension_numbers = #tpu.dot_dimension_numbers<[1], [0], [0], [1], [0, 0, 1, 1], [], []>} : vector<16x256xbf16>, vector<256x128xbf16>, vector<16x128xf32> -> vector<16x128xf32>
    %c0_9 = arith.constant 0 : index
    %c0_10 = arith.constant 0 : index
    %11 = vector.load %arg5[%c0_9, %c0_10] : memref<1x128xf32, #tpu.memory_space<vmem>>, vector<1x128xf32>
    %12 = vector.broadcast %11 : vector<1x128xf32> to vector<16x128xf32>
    %13 = arith.addf %10, %12 : vector<16x128xf32>
    %cst_11 = arith.constant 0.000000e+00 : f32
    %14 = vector.broadcast %cst_11 : f32 to vector<16x128xf32>
    %15 = arith.maximumf %13, %14 : vector<16x128xf32>
    %16 = arith.truncf %15 : vector<16x128xf32> to vector<16x128xbf16>
    %c0_12 = arith.constant 0 : index
    %c0_13 = arith.constant 0 : index
    %17 = vector.load %arg6[%c0_12, %c0_13] : memref<128x128xbf16, #tpu.memory_space<vmem>>, vector<128x128xbf16>
    %cst_14 = arith.constant dense<0.000000e+00> : vector<16x128xf32>
    %18 = tpu.matmul %16, %17, %cst_14 {dimension_numbers = #tpu.dot_dimension_numbers<[1], [0], [0], [1], [0, 0, 1, 1], [], []>} : vector<16x128xbf16>, vector<128x128xbf16>, vector<16x128xf32> -> vector<16x128xf32>
    %c0_15 = arith.constant 0 : index
    %c0_16 = arith.constant 0 : index
    %19 = vector.load %arg7[%c0_15, %c0_16] : memref<1x128xf32, #tpu.memory_space<vmem>>, vector<1x128xf32>
    %20 = vector.broadcast %19 : vector<1x128xf32> to vector<16x128xf32>
    %21 = arith.addf %18, %20 : vector<16x128xf32>
    %cst_17 = arith.constant 0.000000e+00 : f32
    %22 = vector.broadcast %cst_17 : f32 to vector<16x128xf32>
    %23 = arith.maximumf %21, %22 : vector<16x128xf32>
    %24 = arith.truncf %23 : vector<16x128xf32> to vector<16x128xbf16>
    %c0_18 = arith.constant 0 : index
    %c0_19 = arith.constant 0 : index
    %25 = vector.load %arg8[%c0_18, %c0_19] : memref<128x128xbf16, #tpu.memory_space<vmem>>, vector<128x128xbf16>
    %cst_20 = arith.constant dense<0.000000e+00> : vector<16x128xf32>
    %26 = tpu.matmul %24, %25, %cst_20 {dimension_numbers = #tpu.dot_dimension_numbers<[1], [0], [0], [1], [0, 0, 1, 1], [], []>} : vector<16x128xbf16>, vector<128x128xbf16>, vector<16x128xf32> -> vector<16x128xf32>
    %c0_21 = arith.constant 0 : index
    %c0_22 = arith.constant 0 : index
    %27 = vector.load %arg9[%c0_21, %c0_22] : memref<1x128xf32, #tpu.memory_space<vmem>>, vector<1x128xf32>
    %28 = vector.broadcast %27 : vector<1x128xf32> to vector<16x128xf32>
    %29 = arith.addf %26, %28 : vector<16x128xf32>
    %c0_23 = arith.constant 0 : index
    %c0_24 = arith.constant 0 : index
    %30 = vector.load %arg10[%c0_23, %c0_24] : memref<16x128xf32, #tpu.memory_space<vmem>>, vector<16x128xf32>
    tpu.vector_store %arg10[%c0_23, %c0_24], %29 {strides = array<i32>} : memref<16x128xf32, #tpu.memory_space<vmem>>, vector<16x128xf32>,
    return
  }
  func.func @transform_0(%arg0: i32) -> (i32, i32) {
    %c0_i32 = arith.constant 0 : i32
    %c0_i32_0 = arith.constant 0 : i32
    return %arg0, %c0_i32 : i32, i32
  }
  func.func @transform_1(%arg0: i32) -> (i32, i32) {
    %c0_i32 = arith.constant 0 : i32
    %c0_i32_0 = arith.constant 0 : i32
    %c0_i32_1 = arith.constant 0 : i32
    return %c0_i32, %c0_i32_0 : i32, i32
  }
  func.func @transform_2(%arg0: i32) -> (i32, i32) {
    %c0_i32 = arith.constant 0 : i32
    %c0_i32_0 = arith.constant 0 : i32
    %c0_i32_1 = arith.constant 0 : i32
    return %c0_i32, %c0_i32_0 : i32, i32
  }
  func.func @transform_3(%arg0: i32) -> (i32, i32) {
    %c0_i32 = arith.constant 0 : i32
    %c0_i32_0 = arith.constant 0 : i32
    %c0_i32_1 = arith.constant 0 : i32
    return %c0_i32, %c0_i32_0 : i32, i32
  }
  func.func @transform_4(%arg0: i32) -> (i32, i32) {
    %c0_i32 = arith.constant 0 : i32
    %c0_i32_0 = arith.constant 0 : i32
    %c0_i32_1 = arith.constant 0 : i32
    return %c0_i32, %c0_i32_0 : i32, i32
  }
  func.func @transform_5(%arg0: i32) -> (i32, i32) {
    %c0_i32 = arith.constant 0 : i32
    %c0_i32_0 = arith.constant 0 : i32
    %c0_i32_1 = arith.constant 0 : i32
    return %c0_i32, %c0_i32_0 : i32, i32
  }
  func.func @transform_6(%arg0: i32) -> (i32, i32) {
    %c0_i32 = arith.constant 0 : i32
    %c0_i32_0 = arith.constant 0 : i32
    %c0_i32_1 = arith.constant 0 : i32
    return %c0_i32, %c0_i32_0 : i32, i32
  }
  func.func @transform_7(%arg0: i32) -> (i32, i32) {
    %c0_i32 = arith.constant 0 : i32
    %c0_i32_0 = arith.constant 0 : i32
    %c0_i32_1 = arith.constant 0 : i32
    return %c0_i32, %c0_i32_0 : i32, i32
  }
  func.func @transform_8(%arg0: i32) -> (i32, i32) {
    %c0_i32 = arith.constant 0 : i32
    %c0_i32_0 = arith.constant 0 : i32
    %c0_i32_1 = arith.constant 0 : i32
    return %c0_i32, %c0_i32_0 : i32, i32
  }
  func.func @transform_9(%arg0: i32) -> (i32, i32) {
    %c0_i32 = arith.constant 0 : i32
    %c0_i32_0 = arith.constant 0 : i32
    return %arg0, %c0_i32 : i32, i32
  }
}

</mosaic_0001>

<bundles_post_ra>
// kernel: four_layer_mlp.1
= control target key start
LH: loop header
LB: loop body
LE: loop exit
PB: predicated region body
PF: predicated region fallthrough
CT: control target
= control target key end

     0   :  { %vm1945_vm0 = vmmov 0   ;;  %s2562_s1 = inlined_call_operand.vmem [shape: bf16[1024,256], index: 1, kind: input, shape index: {}]   ;;  %s2563_s0 = inlined_call_operand.vmem [shape: bf16[16,1024], index: 0, kind: input, shape index: {}]   ;;  %s2564_s3 = inlined_call_operand.vmem [shape: bf16[256,128], index: 3, kind: input, shape index: {}]   ;;  %s2565_s5 = inlined_call_operand.vmem [shape: bf16[128,128], index: 5, kind: input, shape index: {}]   ;;  %s2566_s2 = inlined_call_operand.vmem [shape: f32[1,256], index: 2, kind: input, shape index: {}]   ;;  %s2567_s7 = inlined_call_operand.vmem [shape: bf16[128,128], index: 7, kind: input, shape index: {}]   ;;  %s2568_s4 = inlined_call_operand.vmem [shape: f32[1,128], index: 4, kind: input, shape index: {}]   ;;  %s2569_s6 = inlined_call_operand.vmem [shape: f32[1,128], index: 6, kind: input, shape index: {}]   ;;  %s2570_s8 = inlined_call_operand.vmem [shape: f32[1,128], index: 8, kind: input, shape index: {}]   ;;  %s2571_s9 = inlined_call_operand.vmem [shape: f32[16,128], index: 9, kind: output, shape index: {}]  }
   0x1   :  { %v1720_v0 = vld [vmem:[%s2562_s1 + $0x104] ss:$8 sps:$4 sm:$0xff]   ;;  %v1722_v1 = vld [vmem:[%s2562_s1 + $0x100] ss:$8 sps:$4 sm:$0xff]   ;;  %v1723_v2 = vld [vmem:[%s2562_s1 + $0x114] ss:$8 sps:$4 sm:$0xff]  }
   0x2   :  { %904 = vmatprep.subr.bf16.mxu0 %v1720_v0  ;;  %v1725_v3 = vld [vmem:[%s2562_s1 + $0x110] ss:$8 sps:$4 sm:$0xff]   ;;  %v1726_v4 = vld [vmem:[%s2562_s1 + $0x124] ss:$8 sps:$4 sm:$0xff]   ;;  %v1728_v5 = vld [vmem:[%s2562_s1 + $0x120] ss:$8 sps:$4 sm:$0xff]  }
   0x3   :  { %905 = vmatpush1.bf16.msra.mxu0 %v1722_v1  ;;  %v1729_v6 = vld [vmem:[%s2562_s1 + $0x134] ss:$8 sps:$4 sm:$0xff]   ;;  %v1731_v7 = vld [vmem:[%s2562_s1 + $0x130] ss:$8 sps:$4 sm:$0xff]   ;;  %v1732_v8 = vld [vmem:[%s2562_s1 + $0x144] ss:$8 sps:$4 sm:$0xff]  }
   0x4   :  { %906 = vmatprep.subr.bf16.mxu0 %v1723_v2  ;;  %v1734_v9 = vld [vmem:[%s2562_s1 + $0x140] ss:$8 sps:$4 sm:$0xff]   ;;  %v1735_v10 = vld [vmem:[%s2562_s1 + $0x154] ss:$8 sps:$4 sm:$0xff]   ;;  %v1737_v11 = vld [vmem:[%s2562_s1 + $0x150] ss:$8 sps:$4 sm:$0xff]  }
   0x5   :  { %v1738_v12 = vld [vmem:[%s2562_s1 + $0x164] ss:$8 sps:$4 sm:$0xff]   ;;  %v1740_v16 = vld [vmem:[%s2562_s1 + $0x160] ss:$8 sps:$4 sm:$0xff]   ;;  %v1741_v17 = vld [vmem:[%s2562_s1 + $0x174] ss:$8 sps:$4 sm:$0xff]  }
   0x6   :  { %v2038_v13 = vld [vmem:[%s2563_s0 + $0x8] sm:$0xff]  ;;  %v1743_v18 = vld [vmem:[%s2562_s1 + $0x170] ss:$8 sps:$4 sm:$0xff]   ;;  %v1747_v21 = vld [vmem:[%s2562_s1 + $0x194] ss:$8 sps:$4 sm:$0xff]  }
   0x7   :  { %907 = vmatpush1.bf16.msra.mxu0 %v1725_v3  ;;  %v2043_v14 = vld [vmem:[%s2563_s0 + $0x28] sm:$0xff]  ;;  %v1749_v22 = vld [vmem:[%s2562_s1 + $0x190] ss:$8 sps:$4 sm:$0xff]   ;;  %v1753_v25 = vld [vmem:[%s2562_s1 + $0x1b4] ss:$8 sps:$4 sm:$0xff]  }
   0x8   :  { %908 = vmatprep.subr.bf16.mxu0 %v1726_v4  ;;  %v1454_v15 = vcombine.high %v2038_v13, %v2043_v14  ;;  %v1744_v19 = vld [vmem:[%s2562_s1 + $0x184] ss:$8 sps:$4 sm:$0xff]   ;;  %v1746_v20 = vld [vmem:[%s2562_s1 + $0x180] ss:$8 sps:$4 sm:$0xff]   ;;  %v1755_v26 = vld [vmem:[%s2562_s1 + $0x1b0] ss:$8 sps:$4 sm:$0xff]   ;;  %v1453_v50 = vcombine.low %v2038_v13, %v2043_v14 }
   0x9   :  { %v1750_v23 = vld [vmem:[%s2562_s1 + $0x1a4] ss:$8 sps:$4 sm:$0xff]   ;;  %v1752_v24 = vld [vmem:[%s2562_s1 + $0x1a0] ss:$8 sps:$4 sm:$0xff]   ;;  %v1819_v30 = vld [vmem:[%s2562_s1 + $0x14] ss:$8 sps:$4 sm:$0xff]  }
   0xa   :  { %936 = vmatprep.mubr.bf16.mxu0 %v1454_v15  ;;  %v1813_v27 = vld [vmem:[%s2562_s1 + $0x4] ss:$8 sps:$4 sm:$0xff]   ;;  %v1815_v28 = vld [vmem:[%s2562_s1] ss:$8 sps:$4 sm:$0xff]   ;;  %v1821_v31 = vld [vmem:[%s2562_s1 + $0x10] ss:$8 sps:$4 sm:$0xff]  }
   0xb   :  { %909 = vmatpush1.bf16.msra.mxu0 %v1728_v5  ;;  %v1756_v29 = vld [vmem:[%s2562_s1 + $0x1c4] ss:$8 sps:$4 sm:$0xff]   ;;  %861 = vmatprep.subr.bf16.mxu1 %v1813_v27  ;;  %v1758_v32 = vld [vmem:[%s2562_s1 + $0x1c0] ss:$8 sps:$4 sm:$0xff]   ;;  %v1759_v33 = vld [vmem:[%s2562_s1 + $0x1d4] ss:$8 sps:$4 sm:$0xff]  }
   0xc   :  { %910 = vmatprep.subr.bf16.mxu0 %v1729_v6  ;;  %862 = vmatpush1.bf16.msra.mxu1 %v1815_v28  ;;  %v1825_v34 = vld [vmem:[%s2562_s1 + $0x24] ss:$8 sps:$4 sm:$0xff]   ;;  %v1827_v35 = vld [vmem:[%s2562_s1 + $0x20] ss:$8 sps:$4 sm:$0xff]   ;;  %v1761_v36 = vld [vmem:[%s2562_s1 + $0x1d0] ss:$8 sps:$4 sm:$0xff]  }
   0xd   :  { %863 = vmatprep.subr.bf16.mxu1 %v1819_v30  ;;  %v1831_v37 = vld [vmem:[%s2562_s1 + $0x34] ss:$8 sps:$4 sm:$0xff]   ;;  %v1762_v38 = vld [vmem:[%s2562_s1 + $0x1e4] ss:$8 sps:$4 sm:$0xff]   ;;  %v1833_v39 = vld [vmem:[%s2562_s1 + $0x30] ss:$8 sps:$4 sm:$0xff]  }
   0xe   :  { %v1837_v40 = vld [vmem:[%s2562_s1 + $0x44] ss:$8 sps:$4 sm:$0xff]   ;;  %v1764_v41 = vld [vmem:[%s2562_s1 + $0x1e0] ss:$8 sps:$4 sm:$0xff]   ;;  %v1765_v42 = vld [vmem:[%s2562_s1 + $0x1f4] ss:$8 sps:$4 sm:$0xff]  }
   0xf   :  { %911 = vmatpush1.bf16.msra.mxu0 %v1731_v7  ;;  %v1839_v43 = vld [vmem:[%s2562_s1 + $0x40] ss:$8 sps:$4 sm:$0xff]   ;;  %v1767_v44 = vld [vmem:[%s2562_s1 + $0x1f0] ss:$8 sps:$4 sm:$0xff]   ;;  %v1843_v45 = vld [vmem:[%s2562_s1 + $0x54] ss:$8 sps:$4 sm:$0xff]  }
  0x10   :  { %912 = vmatprep.subr.bf16.mxu0 %v1732_v8  ;;  %864 = vmatpush1.bf16.msra.mxu1 %v1821_v31  ;;  %v1770_v46 = vld [vmem:[%s2562_s1 + $0x204] ss:$8 sps:$4 sm:$0xff]   ;;  %v2143_v47 = vld [vmem:[%s2563_s0 + $0x10] sm:$0xff]  ;;  %v1768_v52 = vld [vmem:[%s2562_s1 + $0x200] ss:$8 sps:$4 sm:$0xff]  }
  0x11   :  { %865 = vmatprep.subr.bf16.mxu1 %v1825_v34  ;;  %v2148_v48 = vld [vmem:[%s2563_s0 + $0x30] sm:$0xff]  ;;  %v1849_v51 = vld [vmem:[%s2562_s1 + $0x64] ss:$8 sps:$4 sm:$0xff]   ;;  %v1851_v55 = vld [vmem:[%s2562_s1 + $0x60] ss:$8 sps:$4 sm:$0xff]  }
  0x12   :  { %v1845_v49 = vld [vmem:[%s2562_s1 + $0x50] ss:$8 sps:$4 sm:$0xff]   ;;  %v1456_v53 = vcombine.high %v2143_v47, %v2148_v48  ;;  %v1773_v54 = vld [vmem:[%s2562_s1 + $0x214] ss:$8 sps:$4 sm:$0xff]   ;;  %v1776_v58 = vld [vmem:[%s2562_s1 + $0x224] ss:$8 sps:$4 sm:$0xff]  }
  0x13   :  { %913 = vmatpush1.bf16.msra.mxu0 %v1734_v9  ;;  %v1855_v56 = vld [vmem:[%s2562_s1 + $0x74] ss:$8 sps:$4 sm:$0xff]   ;;  %v1771_v57 = vld [vmem:[%s2562_s1 + $0x210] ss:$8 sps:$4 sm:$0xff]   ;;  %v1861_v60 = vld [vmem:[%s2562_s1 + $0x84] ss:$8 sps:$4 sm:$0xff]  }
  0x14   :  { %914 = vmatprep.subr.bf16.mxu0 %v1735_v10  ;;  %866 = vmatpush1.bf16.msra.mxu1 %v1827_v35  ;;  %v1857_v59 = vld [vmem:[%s2562_s1 + $0x70] ss:$8 sps:$4 sm:$0xff]   ;;  %v1774_v61 = vld [vmem:[%s2562_s1 + $0x220] ss:$8 sps:$4 sm:$0xff]   ;;  %v1779_v62 = vld [vmem:[%s2562_s1 + $0x234] ss:$8 sps:$4 sm:$0xff]  }
  0x15   :  { %867 = vmatprep.subr.bf16.mxu1 %v1831_v37  ;;  %v1863_v63 = vld [vmem:[%s2562_s1 + $0x80] ss:$8 sps:$4 sm:$0xff]   ;;  %v1867_v0 = vld [vmem:[%s2562_s1 + $0x94] ss:$8 sps:$4 sm:$0xff]   ;;  %v1777_v1 = vld [vmem:[%s2562_s1 + $0x230] ss:$8 sps:$4 sm:$0xff]  }
  0x16   :  { %v1782_v2 = vld [vmem:[%s2562_s1 + $0x244] ss:$8 sps:$4 sm:$0xff]   ;;  %v1869_v3 = vld [vmem:[%s2562_s1 + $0x90] ss:$8 sps:$4 sm:$0xff]   ;;  %v1780_v5 = vld [vmem:[%s2562_s1 + $0x240] ss:$8 sps:$4 sm:$0xff]  }
  0x17   :  { %915 = vmatpush1.bf16.msra.mxu0 %v1737_v11  ;;  %v1873_v4 = vld [vmem:[%s2562_s1 + $0xa4] ss:$8 sps:$4 sm:$0xff]   ;;  %v1785_v6 = vld [vmem:[%s2562_s1 + $0x254] ss:$8 sps:$4 sm:$0xff]   ;;  %v1875_v7 = vld [vmem:[%s2562_s1 + $0xa0] ss:$8 sps:$4 sm:$0xff]  }
  0x18   :  { %916 = vmatprep.subr.bf16.mxu0 %v1738_v12  ;;  %868 = vmatpush1.bf16.msra.mxu1 %v1833_v39  ;;  %v1879_v8 = vld [vmem:[%s2562_s1 + $0xb4] ss:$8 sps:$4 sm:$0xff]   ;;  %v1783_v9 = vld [vmem:[%s2562_s1 + $0x250] ss:$8 sps:$4 sm:$0xff]   ;;  %v1788_v10 = vld [vmem:[%s2562_s1 + $0x264] ss:$8 sps:$4 sm:$0xff]  }
  0x19   :  { %869 = vmatprep.subr.bf16.mxu1 %v1837_v40  ;;  %v1881_v11 = vld [vmem:[%s2562_s1 + $0xb0] ss:$8 sps:$4 sm:$0xff]   ;;  %v33_v12 = vld [vmem:[%s2563_s0] sm:$0xff]  ;;  %v1903_v27 = vld [vmem:[%s2562_s1 + $0xf4] ss:$8 sps:$4 sm:$0xff]  }
  0x1a   :  { %v37_v13 = vld [vmem:[%s2563_s0 + $0x20] sm:$0xff]  ;;  %v1795_v28 = vld [vmem:[%s2562_s1 + $0x290] ss:$8 sps:$4 sm:$0xff]   ;;  %v1915_v39 = vld [vmem:[%s2564_s3 + $0x8] sm:$0xff]  }
  0x1b   :  { %917 = vmatpush1.bf16.msra.mxu0 %v1740_v16  ;;  %v1885_v14 = vld [vmem:[%s2562_s1 + $0xc4] ss:$8 sps:$4 sm:$0xff]   ;;  %v1452_v15 = vcombine.high %v33_v12, %v37_v13  ;;  %v1786_v16 = vld [vmem:[%s2562_s1 + $0x260] ss:$8 sps:$4 sm:$0xff]   ;;  %v1905_v30 = vld [vmem:[%s2562_s1 + $0xf0] ss:$8 sps:$4 sm:$0xff]   ;;  %v1451_v34 = vcombine.low %v33_v12, %v37_v13 }
  0x1c   :  { %918 = vmatprep.subr.bf16.mxu0 %v1741_v17  ;;  %870 = vmatpush1.bf16.msra.mxu1 %v1839_v43  ;;  %v1791_v17 = vld [vmem:[%s2562_s1 + $0x274] ss:$8 sps:$4 sm:$0xff]   ;;  %v1912_v31 = vld [vmem:[%s2564_s3 + $0x40] sm:$0xff]   ;;  %v1801_v37 = vld [vmem:[%s2562_s1 + $0x2b0] ss:$8 sps:$4 sm:$0xff]  }
  0x1d   :  { %871 = vmatprep.subr.bf16.mxu1 %v1843_v45  ;;  %893 = vmatprep.mubr.bf16.mxu1 %v1452_v15  ;;  %v1913_v35 = vld [vmem:[%s2564_s3] sm:$0xff]   ;;  %v1916_v40 = vld [vmem:[%s2564_s3 + $0x50] sm:$0xff]  }
  0x1e   :  { %v1917_v43 = vld [vmem:[%s2564_s3 + $0x10] sm:$0xff]   ;;  %v1882_v12 = vld [vmem:[%s2562_s1 + $0x3a0] ss:$8 sps:$4 sm:$0xff]   ;;  %v1896_v15 = vld [vmem:[%s2562_s1 + $0x3c4] ss:$8 sps:$4 sm:$0xff]  }
  0x1f   :  { %919 = vmatpush1.bf16.msra.mxu0 %v1743_v18  ;;  %v1887_v18 = vld [vmem:[%s2562_s1 + $0xc0] ss:$8 sps:$4 sm:$0xff]   ;;  %v1807_v45 = vld [vmem:[%s2562_s1 + $0x2d0] ss:$8 sps:$4 sm:$0xff]   ;;  %v1890_v13 = vld [vmem:[%s2562_s1 + $0x3b4] ss:$8 sps:$4 sm:$0xff]  }
  0x20   :  { %920 = vmatprep.subr.bf16.mxu0 %v1744_v19  ;;  %872 = vmatpush1.bf16.msra.mxu1 %v1845_v49  ;;  %v1891_v19 = vld [vmem:[%s2562_s1 + $0xd4] ss:$8 sps:$4 sm:$0xff]  }
  0x21   :  { %873 = vmatprep.subr.bf16.mxu1 %v1849_v51  ;;  %v1919_v49 = vld [vmem:[%s2564_s3 + $0x18] sm:$0xff]  }
  0x22   :  { %v1818_v51 = vld [vmem:[%s2562_s1 + $0x2f4] ss:$8 sps:$4 sm:$0xff]  }
  0x23   :  { %921 = vmatpush1.bf16.msra.mxu0 %v1746_v20  ;;  %v1789_v20 = vld [vmem:[%s2562_s1 + $0x270] ss:$8 sps:$4 sm:$0xff]  }
  0x24   :  { %922 = vmatprep.subr.bf16.mxu0 %v1747_v21  ;;  %874 = vmatpush1.bf16.msra.mxu1 %v1851_v55  ;;  %v1794_v21 = vld [vmem:[%s2562_s1 + $0x284] ss:$8 sps:$4 sm:$0xff]   ;;  %v2351_v55 = vld [vmem:[%s2563_s0 + $0x38] sm:$0xff] }
  0x25   :  { %875 = vmatprep.subr.bf16.mxu1 %v1855_v56  ;;  %v1455_v56 = vcombine.low %v2143_v47, %v2148_v48  ;;  %v1836_v47 = vld [vmem:[%s2562_s1 + $0x324] ss:$8 sps:$4 sm:$0xff]   ;;  %v1834_v48 = vld [vmem:[%s2562_s1 + $0x320] ss:$8 sps:$4 sm:$0xff]  }
  0x27   :  { %923 = vmatpush1.bf16.msra.mxu0 %v1749_v22  ;;  %v1792_v22 = vld [vmem:[%s2562_s1 + $0x280] ss:$8 sps:$4 sm:$0xff]  }
  0x28   :  { %924 = vmatprep.subr.bf16.mxu0 %v1750_v23  ;;  %876 = vmatpush1.bf16.msra.mxu1 %v1857_v59  ;;  %v1893_v23 = vld [vmem:[%s2562_s1 + $0xd0] ss:$8 sps:$4 sm:$0xff]   ;;  %v1830_v59 = vld [vmem:[%s2562_s1 + $0x314] ss:$8 sps:$4 sm:$0xff]  }
  0x29   :  { %877 = vmatprep.subr.bf16.mxu1 %v1861_v60  ;;  %v1828_v60 = vld [vmem:[%s2562_s1 + $0x310] ss:$8 sps:$4 sm:$0xff]  }
  0x2b   :  { %925 = vmatpush1.bf16.msra.mxu0 %v1752_v24  ;;  %v1797_v24 = vld [vmem:[%s2562_s1 + $0x294] ss:$8 sps:$4 sm:$0xff]  }
  0x2c   :  { %926 = vmatprep.subr.bf16.mxu0 %v1753_v25  ;;  %878 = vmatpush1.bf16.msra.mxu1 %v1863_v63  ;;  %v1897_v25 = vld [vmem:[%s2562_s1 + $0xe4] ss:$8 sps:$4 sm:$0xff]  }
  0x2d   :  { %879 = vmatprep.subr.bf16.mxu1 %v1867_v0  ;;  %v1848_v63 = vld [vmem:[%s2562_s1 + $0x344] ss:$8 sps:$4 sm:$0xff]   ;;  %v1846_v0 = vld [vmem:[%s2562_s1 + $0x340] ss:$8 sps:$4 sm:$0xff]  }
  0x2f   :  { %927 = vmatpush1.bf16.msra.mxu0 %v1755_v26  ;;  %v1899_v26 = vld [vmem:[%s2562_s1 + $0xe0] ss:$8 sps:$4 sm:$0xff]  }
  0x30   :  { %928 = vmatprep.subr.bf16.mxu0 %v1756_v29  ;;  %880 = vmatpush1.bf16.msra.mxu1 %v1869_v3  ;;  %v1800_v29 = vld [vmem:[%s2562_s1 + $0x2a4] ss:$8 sps:$4 sm:$0xff]  }
  0x31   :  { %881 = vmatprep.subr.bf16.mxu1 %v1873_v4  ;;  %v1860_v3 = vld [vmem:[%s2562_s1 + $0x364] ss:$8 sps:$4 sm:$0xff]   ;;  %v1858_v4 = vld [vmem:[%s2562_s1 + $0x360] ss:$8 sps:$4 sm:$0xff]  }
  0x33   :  { %929 = vmatpush1.bf16.msra.mxu0 %v1758_v32  ;;  %v1798_v32 = vld [vmem:[%s2562_s1 + $0x2a0] ss:$8 sps:$4 sm:$0xff]  }
  0x34   :  { %930 = vmatprep.subr.bf16.mxu0 %v1759_v33  ;;  %882 = vmatpush1.bf16.msra.mxu1 %v1875_v7  ;;  %v1803_v33 = vld [vmem:[%s2562_s1 + $0x2b4] ss:$8 sps:$4 sm:$0xff]   ;;  %v1872_v7 = vld [vmem:[%s2562_s1 + $0x384] ss:$8 sps:$4 sm:$0xff]  }
  0x35   :  { %883 = vmatprep.subr.bf16.mxu1 %v1879_v8  ;;  %v1870_v8 = vld [vmem:[%s2562_s1 + $0x380] ss:$8 sps:$4 sm:$0xff]  }
  0x37   :  { %931 = vmatpush1.bf16.msra.mxu0 %v1761_v36  ;;  %v1914_v36 = vld [vmem:[%s2564_s3 + $0x48] sm:$0xff]  }
  0x38   :  { %932 = vmatprep.subr.bf16.mxu0 %v1762_v38  ;;  %884 = vmatpush1.bf16.msra.mxu1 %v1881_v11  ;;  %v1806_v38 = vld [vmem:[%s2562_s1 + $0x2c4] ss:$8 sps:$4 sm:$0xff]  }
  0x39   :  { %885 = vmatprep.subr.bf16.mxu1 %v1885_v14  ;;  %v1884_v11 = vld [vmem:[%s2562_s1 + $0x3a4] ss:$8 sps:$4 sm:$0xff]   ;;  %v1888_v14 = vld [vmem:[%s2562_s1 + $0x3b0] ss:$8 sps:$4 sm:$0xff]  }
  0x3b   :  { %933 = vmatpush1.bf16.msra.mxu0 %v1764_v41  ;;  %v1804_v41 = vld [vmem:[%s2562_s1 + $0x2c0] ss:$8 sps:$4 sm:$0xff]  }
  0x3c   :  { %934 = vmatprep.subr.bf16.mxu0 %v1765_v42  ;;  %886 = vmatpush1.bf16.msra.mxu1 %v1887_v18  ;;  %v1809_v42 = vld [vmem:[%s2562_s1 + $0x2d4] ss:$8 sps:$4 sm:$0xff]   ;;  %v1900_v18 = vld [vmem:[%s2562_s1 + $0x3d0] ss:$8 sps:$4 sm:$0xff]  }
  0x3d   :  { %887 = vmatprep.subr.bf16.mxu1 %v1891_v19  ;;  %v1908_v19 = vld [vmem:[%s2562_s1 + $0x3e4] ss:$8 sps:$4 sm:$0xff]  }
  0x3f   :  { %935 = vmatpush1.bf16.msra.mxu0 %v1767_v44  ;;  %v1918_v44 = vld [vmem:[%s2564_s3 + $0x58] sm:$0xff]  }
  0x40   :  { %947 = vmatprep.subr.bf16.mxu0 %v1770_v46  ;;  %888 = vmatpush1.bf16.msra.mxu1 %v1893_v23  ;;  %v1812_v46 = vld [vmem:[%s2562_s1 + $0x2e4] ss:$8 sps:$4 sm:$0xff]  }
  0x41   :  { %889 = vmatprep.subr.bf16.mxu1 %v1897_v25  ;;  %v1921_v25 = vld [vmem:[%s2564_s3 + $0x20] sm:$0xff]  }
  0x42   :  { %937 = vmatmul.mubr.bf16.vlgmr.msra.gmra.mrb[0].mxu0 %v1453_v50  ;;  %v1810_v50 = vld [vmem:[%s2562_s1 + $0x2e0] ss:$8 sps:$4 sm:$0xff]  }
  0x43   :  { %948 = vmatpush1.bf16.msra.mxu0 %v1768_v52  ;;  %979 = vmatprep.mubr.bf16.mxu0 %v1456_v53  ;;  %v1816_v52 = vld [vmem:[%s2562_s1 + $0x2f0] ss:$8 sps:$4 sm:$0xff]   ;;  %v1824_v53 = vld [vmem:[%s2562_s1 + $0x304] ss:$8 sps:$4 sm:$0xff]  }
  0x44   :  { %949 = vmatprep.subr.bf16.mxu0 %v1773_v54  ;;  %890 = vmatpush1.bf16.msra.mxu1 %v1899_v26  ;;  %v2346_v54 = vld [vmem:[%s2563_s0 + $0x18] sm:$0xff]  ;;  %v1922_v26 = vld [vmem:[%s2564_s3 + $0x68] sm:$0xff]  }
  0x45   :  { %891 = vmatprep.subr.bf16.mxu1 %v1903_v27  ;;  %v1457_v23 = vcombine.low %v2346_v54, %v2351_v55  ;;  %v1923_v27 = vld [vmem:[%s2564_s3 + $0x28] sm:$0xff]  }
  0x47   :  { %950 = vmatpush1.bf16.msra.mxu0 %v1771_v57  ;;  %v1822_v57 = vld [vmem:[%s2562_s1 + $0x300] ss:$8 sps:$4 sm:$0xff]  }
  0x48   :  { %951 = vmatprep.subr.bf16.mxu0 %v1776_v58  ;;  %892 = vmatpush1.bf16.msra.mxu1 %v1905_v30  ;;  %v1458_v58 = vcombine.high %v2346_v54, %v2351_v55  ;;  %v1926_v30 = vld [vmem:[%s2564_s3 + $0x78] sm:$0xff]  }
  0x49   :  { %1622 = vmatprep.subr.bf16.mxu1 %v1912_v31  ;;  %v1927_v31 = vld [vmem:[%s2564_s3 + $0x38] sm:$0xff]  }
  0x4b   :  { %952 = vmatpush1.bf16.msra.mxu0 %v1774_v61  ;;  %894 = vmatmul.mubr.bf16.vlgmr.msra.gmra.mrb[0].mxu1 %v1451_v34  ;;  %v1842_v61 = vld [vmem:[%s2562_s1 + $0x334] ss:$8 sps:$4 sm:$0xff]  }
  0x4c   :  { %953 = vmatprep.subr.bf16.mxu0 %v1779_v62  ;;  %1623 = vmatpush3.bf16.msra.mxu1 %v1913_v35  ;;  %v1840_v62 = vld [vmem:[%s2562_s1 + $0x330] ss:$8 sps:$4 sm:$0xff]  }
  0x4d   :  { %1624 = vmatprep.subr.bf16.mxu1 %v1914_v36 }
  0x4f   :  { %954 = vmatpush1.bf16.msra.mxu0 %v1777_v1  ;;  %v1854_v1 = vld [vmem:[%s2562_s1 + $0x354] ss:$8 sps:$4 sm:$0xff]  }
  0x50   :  { %955 = vmatprep.subr.bf16.mxu0 %v1782_v2  ;;  %1625 = vmatpush3.bf16.msra.mxu1 %v1915_v39  ;;  %v1852_v2 = vld [vmem:[%s2562_s1 + $0x350] ss:$8 sps:$4 sm:$0xff]  }
  0x51   :  { %1626 = vmatprep.subr.bf16.mxu1 %v1916_v40  ;;  %v169_v40 = vld [vmem:[%s2566_s2] sm:$0x3] }
  0x53   :  { %956 = vmatpush1.bf16.msra.mxu0 %v1780_v5  ;;  %v1866_v5 = vld [vmem:[%s2562_s1 + $0x374] ss:$8 sps:$4 sm:$0xff]  }
  0x54   :  { %957 = vmatprep.subr.bf16.mxu0 %v1785_v6  ;;  %1627 = vmatpush3.bf16.msra.mxu1 %v1917_v43  ;;  %v1864_v6 = vld [vmem:[%s2562_s1 + $0x370] ss:$8 sps:$4 sm:$0xff]  }
  0x55   :  { %1628 = vmatprep.subr.bf16.mxu1 %v1918_v44 }
  0x57   :  { %958 = vmatpush1.bf16.msra.mxu0 %v1783_v9  ;;  %v1878_v9 = vld [vmem:[%s2562_s1 + $0x394] ss:$8 sps:$4 sm:$0xff]  }
  0x58   :  { %959 = vmatprep.subr.bf16.mxu0 %v1788_v10  ;;  %1629 = vmatpush3.bf16.msra.mxu1 %v1919_v49  ;;  %v1876_v10 = vld [vmem:[%s2562_s1 + $0x390] ss:$8 sps:$4 sm:$0xff]  }
  0x5b   :  { %960 = vmatpush1.bf16.msra.mxu0 %v1786_v16  ;;  %v1894_v16 = vld [vmem:[%s2562_s1 + $0x3c0] ss:$8 sps:$4 sm:$0xff]  }
  0x5c   :  { %961 = vmatprep.subr.bf16.mxu0 %v1791_v17  ;;  %v1902_v17 = vld [vmem:[%s2562_s1 + $0x3d4] ss:$8 sps:$4 sm:$0xff]  }
  0x5f   :  { %962 = vmatpush1.bf16.msra.mxu0 %v1789_v20  ;;  %v1906_v20 = vld [vmem:[%s2562_s1 + $0x3e0] ss:$8 sps:$4 sm:$0xff]  }
  0x60   :  { %963 = vmatprep.subr.bf16.mxu0 %v1794_v21  ;;  %v1911_v21 = vld [vmem:[%s2562_s1 + $0x3f4] ss:$8 sps:$4 sm:$0xff]  }
  0x63   :  { %964 = vmatpush1.bf16.msra.mxu0 %v1792_v22  ;;  %v1909_v22 = vld [vmem:[%s2562_s1 + $0x3f0] ss:$8 sps:$4 sm:$0xff]  }
  0x64   :  { %965 = vmatprep.subr.bf16.mxu0 %v1797_v24  ;;  %v1920_v24 = vld [vmem:[%s2564_s3 + $0x60] sm:$0xff]  }
  0x65   :  { %1630 = vmatprep.subr.bf16.mxu1 %v1920_v24  ;;  %v1942_v24 = vld [vmem:[%s2567_s7 + $0x30] sm:$0xff]  }
  0x66   :  { %1631 = vmatpush3.bf16.msra.mxu1 %v1921_v25  ;;  %v1943_v25 = vld [vmem:[%s2567_s7 + $0x38] sm:$0xff]  }
  0x67   :  { %966 = vmatpush1.bf16.msra.mxu0 %v1795_v28  ;;  %1632 = vmatprep.subr.bf16.mxu1 %v1922_v26  ;;  %v1924_v28 = vld [vmem:[%s2564_s3 + $0x70] sm:$0xff]   ;;  %v1604_v26 = vld [vmem:[%s2569_s6] ss:$0 sm:$0xff] }
  0x68   :  { %967 = vmatprep.subr.bf16.mxu0 %v1800_v29  ;;  %v1925_v29 = vld [vmem:[%s2564_s3 + $0x30] sm:$0xff]  }
  0x6a   :  { %1633 = vmatpush3.bf16.msra.mxu1 %v1923_v27 }
  0x6b   :  { %968 = vmatpush1.bf16.msra.mxu0 %v1798_v32  ;;  %1634 = vmatprep.subr.bf16.mxu1 %v1924_v28  ;;  %v1944_v32 = vmov 0.0  }
  0x6c   :  { %969 = vmatprep.subr.bf16.mxu0 %v1803_v33 }
  0x6e   :  { %1635 = vmatpush3.bf16.msra.mxu1 %v1925_v29 }
  0x6f   :  { %970 = vmatpush1.bf16.msra.mxu0 %v1801_v37  ;;  %1636 = vmatprep.subr.bf16.mxu1 %v1926_v30  ;;  %v171_v37 = vlaneseq }
  0x70   :  { %971 = vmatprep.subr.bf16.mxu0 %v1806_v38 }
  0x71   :  { %v172_v38 = vshrl.u32 %v171_v37, 7 }
  0x72   :  { %1637 = vmatpush3.bf16.msra.mxu1 %v1927_v31 }
  0x73   :  { %972 = vmatpush1.bf16.msra.mxu0 %v1804_v41  ;;  %1662 = vmatprep.subr.bf16.mxu1 %v1944_v32  ;;  %v173_v39 = vsub.s32 0, %v172_v38  ;;  %v177_v41 = vsub.s32 1, %v172_v38 }
  0x74   :  { %973 = vmatprep.subr.bf16.mxu0 %v1809_v42 }
  0x75   :  { %v174_v42 = vrot.slane %v169_v40, %v173_v39  ;;  %v178_v43 = vrot.slane %v169_v40, %v177_v41 }
  0x77   :  { %974 = vmatpush1.bf16.msra.mxu0 %v1807_v45 }
  0x78   :  { %975 = vmatprep.subr.bf16.mxu0 %v1812_v46 }
  0x7b   :  { %976 = vmatpush1.bf16.msra.mxu0 %v1810_v50 }
  0x7c   :  { %977 = vmatprep.subr.bf16.mxu0 %v1818_v51 }
  0x7f   :  { %978 = vmatpush1.bf16.msra.mxu0 %v1816_v52 }
  0x80   :  { %990 = vmatprep.subr.bf16.mxu0 %v1824_v53 }
  0x82   :  { %980 = vmatmul.mubr.bf16.vlgmr.msra.gmra.mrb[0].mxu0 %v1455_v56 }
  0x83   :  { %991 = vmatpush1.bf16.msra.mxu0 %v1822_v57  ;;  %1022 = vmatprep.mubr.bf16.mxu0 %v1458_v58 }
  0x84   :  { %992 = vmatprep.subr.bf16.mxu0 %v1830_v59 }
  0x87   :  { %993 = vmatpush1.bf16.msra.mxu0 %v1828_v60 }
  0x88   :  { %994 = vmatprep.subr.bf16.mxu0 %v1836_v47 }
  0x8b   :  { %995 = vmatpush1.bf16.msra.mxu0 %v1834_v48 }
  0x8c   :  { %996 = vmatprep.subr.bf16.mxu0 %v1842_v61 }
  0x8f   :  { %997 = vmatpush1.bf16.msra.mxu0 %v1840_v62  ;;  %v1928_v62 = vld [vmem:[%s2565_s5] sm:$0xff]  }
  0x90   :  { %998 = vmatprep.subr.bf16.mxu0 %v1848_v63  ;;  %v1929_v63 = vld [vmem:[%s2565_s5 + $0x8] sm:$0xff]  }
  0x93   :  { %999 = vmatpush1.bf16.msra.mxu0 %v1846_v0  ;;  %v1930_v0 = vld [vmem:[%s2565_s5 + $0x10] sm:$0xff]  }
  0x94   :  { %1000 = vmatprep.subr.bf16.mxu0 %v1854_v1  ;;  %v1931_v1 = vld [vmem:[%s2565_s5 + $0x18] sm:$0xff]  }
  0x97   :  { %1001 = vmatpush1.bf16.msra.mxu0 %v1852_v2  ;;  %v1932_v2 = vld [vmem:[%s2565_s5 + $0x20] sm:$0xff]  }
  0x98   :  { %1002 = vmatprep.subr.bf16.mxu0 %v1860_v3  ;;  %v1933_v3 = vld [vmem:[%s2565_s5 + $0x28] sm:$0xff]  }
  0x9b   :  { %1003 = vmatpush1.bf16.msra.mxu0 %v1858_v4  ;;  %v1934_v4 = vld [vmem:[%s2565_s5 + $0x30] sm:$0xff]  }
  0x9c   :  { %1004 = vmatprep.subr.bf16.mxu0 %v1866_v5  ;;  %v1935_v5 = vld [vmem:[%s2565_s5 + $0x38] sm:$0xff]  }
  0x9f   :  { %1005 = vmatpush1.bf16.msra.mxu0 %v1864_v6 }
  0xa0   :  { %1006 = vmatprep.subr.bf16.mxu0 %v1872_v7  ;;  %v1587_v7 = vld [vmem:[%s2568_s4] ss:$0 sm:$0xff] }
  0xa3   :  { %1007 = vmatpush1.bf16.msra.mxu0 %v1870_v8 }
  0xa4   :  { %1008 = vmatprep.subr.bf16.mxu0 %v1878_v9 }
  0xa7   :  { %1009 = vmatpush1.bf16.msra.mxu0 %v1876_v10 }
  0xa8   :  { %1010 = vmatprep.subr.bf16.mxu0 %v1884_v11 }
  0xab   :  { %1011 = vmatpush1.bf16.msra.mxu0 %v1882_v12 }
  0xac   :  { %1012 = vmatprep.subr.bf16.mxu0 %v1890_v13 }
  0xaf   :  { %1013 = vmatpush1.bf16.msra.mxu0 %v1888_v14 }
  0xb0   :  { %1014 = vmatprep.subr.bf16.mxu0 %v1896_v15 }
  0xb3   :  { %1015 = vmatpush1.bf16.msra.mxu0 %v1894_v16 }
  0xb4   :  { %1016 = vmatprep.subr.bf16.mxu0 %v1902_v17  ;;  %v1936_v17 = vld [vmem:[%s2567_s7] sm:$0xff]  }
  0xb7   :  { %1017 = vmatpush1.bf16.msra.mxu0 %v1900_v18 }
  0xb8   :  { %1018 = vmatprep.subr.bf16.mxu0 %v1908_v19  ;;  %v1937_v19 = vld [vmem:[%s2567_s7 + $0x8] sm:$0xff]  }
  0xbb   :  { %1019 = vmatpush1.bf16.msra.mxu0 %v1906_v20  ;;  %v1938_v20 = vld [vmem:[%s2567_s7 + $0x10] sm:$0xff]  }
  0xbc   :  { %1020 = vmatprep.subr.bf16.mxu0 %v1911_v21  ;;  %v1939_v21 = vld [vmem:[%s2567_s7 + $0x18] sm:$0xff]  }
  0xbf   :  { %1021 = vmatpush1.bf16.msra.mxu0 %v1909_v22  ;;  %v1940_v22 = vld [vmem:[%s2567_s7 + $0x20] sm:$0xff]  }
  0xc2   :  { %1023 = vmatmul.mubr.bf16.vlgmr.msra.gmra.mrb[0].mxu0 %v1457_v23  ;;  %v1941_v23 = vld [vmem:[%s2567_s7 + $0x28] sm:$0xff]  }
 0x11e   :  { %v895_v33 = vpop.f32.mrb[0].mxu1 }
 0x11f   :  { %v897_v34 = vpop.f32.mrb[1].mxu1  ;;  %v896_v44 = vadd.f32 %v895_v33, %v174_v42 }
 0x120   :  { %v899_v35 = vpop.f32.mrb[2].mxu1  ;;  %v898_v45 = vadd.f32 %v897_v34, %v178_v43 }
 0x121   :  { %v901_v36 = vpop.f32.mrb[3].mxu1  ;;  %v900_v49 = vadd.f32 %v899_v35, %v174_v42 }
 0x122   :  { %v902_v52 = vadd.f32 %v901_v36, %v178_v43 }
 0x195   :  { %v1024_v46 = vpop.f32.mrb[0].mxu0 }
 0x196   :  { %v1703_v50 = vadd.f32 %v1024_v46, %v896_v44  ;;  %v1026_v51 = vpop.f32.mrb[1].mxu0 }
 0x197   :  { %v1705_v53 = vadd.f32 %v1026_v51, %v898_v45  ;;  %v1028_v54 = vpop.f32.mrb[2].mxu0 }
 0x198   :  { %v1707_v55 = vadd.f32 %v1028_v54, %v900_v49  ;;  %v1030_v56 = vpop.f32.mrb[3].mxu0  ;;  %v1033_v58 = vmax.f32 %v1703_v50, 0.0 }
 0x199   :  { %v1709_v57 = vadd.f32 %v1030_v56, %v902_v52  ;;  %v1034_v60 = vmax.f32 %v1705_v53, 0.0 }
 0x19a   :  { %v1035_v59 = vmax.f32 %v1707_v55, 0.0 }
 0x19b   :  { %v1036_v47 = vmax.f32 %v1709_v57, 0.0 }
 0x19c   :  { %v1037_v48 = vpack.c.bf16 %v1035_v59, %v1033_v58 }
 0x19d   :  { %v1038_v61 = vpack.c.bf16 %v1036_v47, %v1034_v60 }
 0x19f   :  { %1206 = vmatprep.mubr.bf16.mxu1 %v1038_v61 }
 0x1a0   :  { %1207 = vmatmul.mubr.bf16.vlgmr.msra.gmra.mrb[4].mxu1 %v1037_v48 }
 0x1a1   :  { %1663 = vmatpush3.bf16.msra.mxu1 %v1928_v62  ;;  %1678 = vmatprep.mubr.msk.bf16.mxu1 %vm1945_vm0, %v1944_v32 }
 0x1a2   :  { %1664 = vmatprep.subr.bf16.mxu1 %v1944_v32 }
 0x1a5   :  { %1665 = vmatpush3.bf16.msra.mxu1 %v1929_v63 }
 0x1a6   :  { %1666 = vmatprep.subr.bf16.mxu1 %v1944_v32 }
 0x1a9   :  { %1667 = vmatpush3.bf16.msra.mxu1 %v1930_v0 }
 0x1aa   :  { %1668 = vmatprep.subr.bf16.mxu1 %v1944_v32 }
 0x1ad   :  { %1669 = vmatpush3.bf16.msra.mxu1 %v1931_v1 }
 0x1ae   :  { %1670 = vmatprep.subr.bf16.mxu1 %v1944_v32 }
 0x1b1   :  { %1671 = vmatpush3.bf16.msra.mxu1 %v1932_v2 }
 0x1b2   :  { %1672 = vmatprep.subr.bf16.mxu1 %v1944_v32 }
 0x1b5   :  { %1673 = vmatpush3.bf16.msra.mxu1 %v1933_v3 }
 0x1b6   :  { %1674 = vmatprep.subr.bf16.mxu1 %v1944_v32 }
 0x1b9   :  { %1675 = vmatpush3.bf16.msra.mxu1 %v1934_v4 }
 0x1ba   :  { %1676 = vmatprep.subr.bf16.mxu1 %v1944_v32 }
 0x1bd   :  { %1677 = vmatpush3.bf16.msra.mxu1 %v1935_v5 }
 0x1be   :  { %1682 = vmatprep.subr.bf16.mxu1 %v1944_v32 }
 0x273   :  { %v1638_v6 = vpop.f32.mrb[4].mxu1 }
 0x274   :  { %v1639_v8 = vpop.f32.mrb[5].mxu1 }
 0x275   :  { %v1640_v9 = vadd.f32 %v1639_v8, %v1638_v6  ;;  %v1641_v10 = vpop.f32.mrb[6].mxu1 }
 0x276   :  { %v1642_v11 = vpop.f32.mrb[7].mxu1 }
 0x277   :  { %v1209_v12 = vadd.f32 %v1640_v9, %v1587_v7  ;;  %v1643_v13 = vadd.f32 %v1642_v11, %v1641_v10 }
 0x279   :  { %v1212_v14 = vadd.f32 %v1643_v13, %v1587_v7  ;;  %v1215_v15 = vmax.f32 %v1209_v12, 0.0 }
 0x27b   :  { %v1216_v16 = vmax.f32 %v1212_v14, 0.0 }
 0x27d   :  { %v1217_v18 = vpack.c.bf16 %v1216_v16, %v1215_v15 }
 0x27f   :  { %1679 = vmatmul.mubr.bf16.vlgmr.msra.gmra.mrb[8].mxu1 %v1217_v18 }
 0x280   :  { %1683 = vmatpush3.bf16.msra.mxu1 %v1936_v17  ;;  %1698 = vmatprep.mubr.msk.bf16.mxu1 %vm1945_vm0, %v1944_v32 }
 0x281   :  { %1684 = vmatprep.subr.bf16.mxu1 %v1944_v32 }
 0x284   :  { %1685 = vmatpush3.bf16.msra.mxu1 %v1937_v19 }
 0x285   :  { %1686 = vmatprep.subr.bf16.mxu1 %v1944_v32 }
 0x288   :  { %1687 = vmatpush3.bf16.msra.mxu1 %v1938_v20 }
 0x289   :  { %1688 = vmatprep.subr.bf16.mxu1 %v1944_v32 }
 0x28c   :  { %1689 = vmatpush3.bf16.msra.mxu1 %v1939_v21 }
 0x28d   :  { %1690 = vmatprep.subr.bf16.mxu1 %v1944_v32 }
 0x290   :  { %1691 = vmatpush3.bf16.msra.mxu1 %v1940_v22 }
 0x291   :  { %1692 = vmatprep.subr.bf16.mxu1 %v1944_v32 }
 0x294   :  { %1693 = vmatpush3.bf16.msra.mxu1 %v1941_v23 }
 0x295   :  { %1694 = vmatprep.subr.bf16.mxu1 %v1944_v32 }
 0x298   :  { %1695 = vmatpush3.bf16.msra.mxu1 %v1942_v24 }
 0x299   :  { %1696 = vmatprep.subr.bf16.mxu1 %v1944_v32  ;;  %v1613_v32 = vld [vmem:[%s2570_s8] ss:$0 sm:$0xff] }
 0x29c   :  { %1697 = vmatpush3.bf16.msra.mxu1 %v1943_v25 }
 0x352   :  { %v1323_v27 = vpop.f32.mrb[8].mxu1 }
 0x353   :  { %v1324_v28 = vadd.f32 %v1604_v26, %v1323_v27  ;;  %v1680_v29 = vpop.f32.mrb[9].mxu1 }
 0x354   :  { %v1326_v30 = vpop.f32.mrb[10].mxu1 }
 0x355   :  { %v1327_v31 = vadd.f32 %v1604_v26, %v1326_v30  ;;  %v1681_v33 = vpop.f32.mrb[11].mxu1  ;;  %v1330_v34 = vmax.f32 %v1324_v28, 0.0 }
 0x357   :  { %v1331_v35 = vmax.f32 %v1327_v31, 0.0 }
 0x359   :  { %v1332_v36 = vpack.c.bf16 %v1331_v35, %v1330_v34 }
 0x35b   :  { %1699 = vmatmul.mubr.bf16.vlgmr.msra.gmra.mrb[12].mxu1 %v1332_v36 }
 0x42e   :  { %v1438_v37 = vpop.f32.mrb[12].mxu1 }
 0x42f   :  { %v1439_v38 = vadd.f32 %v1613_v32, %v1438_v37  ;;  %v1700_v39 = vpop.f32.mrb[13].mxu1 }
 0x430   :  { %v1441_v40 = vpop.f32.mrb[14].mxu1 }
 0x431   :  { %1445 = vst [vmem:[%s2571_s9] sm:$0xff] %v1439_v38  ;;  %v1442_v41 = vadd.f32 %v1613_v32, %v1441_v40  ;;  %v1701_v42 = vpop.f32.mrb[15].mxu1 }
 0x433   :  { %1446 = vst [vmem:[%s2571_s9 + $0x8] sm:$0xff] %v1442_v41 }

</bundles_post_ra>
